<compile_context>
chip_gen: v7x
topology: tpu7x:2x2x1
jax: 0.10.0
libtpu: 0.0.40
codegen_flags: <defaults>
</compile_context>

<pallas_src>
import functools

import jax
import jax.numpy as jnp
from jax.experimental import pallas as pl
from jax.experimental.pallas import tpu as pltpu


def _round_up(n, m):
    return (n + m - 1) // m * m


def _pick_tile(total_padded, unit, max_tile):
    """Largest t with t % unit == 0, t divides total_padded, t <= max_tile."""
    q = total_padded // unit
    limit = max(max_tile // unit, 1)
    best = 1
    for d in range(1, q + 1):
        if q % d == 0 and d <= limit:
            best = d
    return best * unit


# ----------------------------------------------------------------------------
# Kernels
# ----------------------------------------------------------------------------
def _linear_sigmoid_kernel_k1(x_ref, w_ref, b_ref, o_ref):
    # Single-K-tile fast path: no accumulator scratch, no pl.when bookkeeping.
    y = jnp.dot(x_ref[...], w_ref[...], preferred_element_type=jnp.float32)
    o_ref[...] = jax.nn.sigmoid(y + b_ref[...]).astype(o_ref.dtype)


def _linear_sigmoid_kernel_multi_k(x_ref, w_ref, b_ref, o_ref, acc_ref):
    # x_ref : (tb, tk)  bf16
    # w_ref : (tk, tn)  bf16
    # b_ref : (1, tn)   f32
    # o_ref : (tb, tn)  f32
    # acc_ref: (tb, tn) f32 VMEM scratch, resident across the K axis
    # Only used when num_programs(2) >= 2.
    k = pl.program_id(2)
    last = pl.num_programs(2) - 1

    partial = jnp.dot(x_ref[...], w_ref[...], preferred_element_type=jnp.float32)

    @pl.when(k == 0)
    def _():
        acc_ref[...] = partial

    @pl.when(jnp.logical_and(k > 0, k < last))
    def _():
        acc_ref[...] = acc_ref[...] + partial

    @pl.when(k == last)
    def _():
        # Fuse the final partial product + bias + sigmoid: no accumulator
        # writeback on the last K step; f32 epilogue on all generations.
        y = acc_ref[...] + partial + b_ref[...]
        o_ref[...] = jax.nn.sigmoid(y).astype(o_ref.dtype)


# ----------------------------------------------------------------------------
# One-time parameter preparation (model init)
# ----------------------------------------------------------------------------
def prepare_linear_params(weight, bias, *, max_tile_n=1024, max_tile_k=2048):
    """weight: [D_out, D_in] (PyTorch nn.Linear layout), bias: [D_out].

    Pads D_out / D_in only up to multiples of 128 and picks tile_n / tile_k as
    exact divisors of the padded sizes (no extra padding waste).  Transpose /
    cast / pad of W happen once here, never in the forward path.
    """
    D_out, D_in = weight.shape
    Np = _round_up(D_out, 128)
    Kp = _round_up(D_in, 128)
    tn = _pick_tile(Np, 128, max_tile_n)
    tk = _pick_tile(Kp, 128, max_tile_k)

    w_t = (
        jnp.zeros((Kp, Np), jnp.bfloat16)
        .at[:D_in, :D_out]
        .set(weight.T.astype(jnp.bfloat16))
    )
    b2 = (
        jnp.zeros((1, Np), jnp.float32)
        .at[:, :D_out]
        .set(bias.reshape(1, D_out).astype(jnp.float32))
    )
    return w_t, b2, D_out, tn, tk


# ----------------------------------------------------------------------------
# Forward (ModifiedModel(Linear).forward)
# ----------------------------------------------------------------------------
def modified_model_forward(x, w_t, b2, d_out, tile_n, tile_k, *, max_tile_b=512):
    """x: [B, D_in] f32 -> sigmoid(x @ W^T + b): [B, d_out] f32."""
    B, D_in = x.shape
    Kp, Np = w_t.shape

    # bf16 sublane packing is (16, 128): keep the M tile a multiple of 16.
    Bp = _round_up(B, 16)
    tb = _pick_tile(Bp, 16, max_tile_b)

    # Avoid re-materializing x when it is already tile-aligned.
    if B == Bp and D_in == Kp:
        x_p = x.astype(jnp.bfloat16)
    else:
        x_p = (
            jnp.zeros((Bp, Kp), jnp.bfloat16)
            .at[:B, :D_in]
            .set(x.astype(jnp.bfloat16))
        )

    m_tiles = Bp // tb
    n_tiles = Np // tile_n
    k_tiles = Kp // tile_k

    # Explicit VMEM limit: double-buffered x/w/out (+bias) + f32 accumulator.
    est = (
        2 * tb * tile_k * 2          # x  (bf16, double buffered)
        + 2 * tile_k * tile_n * 2    # w  (bf16, double buffered)
        + 2 * tb * tile_n * 4        # out (f32, double buffered)
        + 2 * tile_n * 4             # bias
        + (tb * tile_n * 4 if k_tiles > 1 else 0)  # accumulator scratch
    )
    vmem_limit = int(min(max(2 * est, 16 << 20), 48 << 20))

    out_shape = jax.ShapeDtypeStruct((Bp, Np), jnp.float32)

    if k_tiles == 1:
        # Fast path: whole reduction in one MXU pass per (i, j) block.
        dims = ("arbitrary", "parallel") if n_tiles > 1 else ("parallel", "arbitrary")
        out = pl.pallas_call(
            _linear_sigmoid_kernel_k1,
            out_shape=out_shape,
            grid_spec=pltpu.PrefetchScalarGridSpec(
                num_scalar_prefetch=0,
                grid=(m_tiles, n_tiles),
                in_specs=[
                    pl.BlockSpec((tb, tile_k), lambda i, j: (i, 0)),
                    pl.BlockSpec((tile_k, tile_n), lambda i, j: (0, j)),
                    pl.BlockSpec((1, tile_n), lambda i, j: (0, j)),
                ],
                out_specs=pl.BlockSpec((tb, tile_n), lambda i, j: (i, j)),
            ),
            compiler_params=pltpu.CompilerParams(
                dimension_semantics=dims,
                vmem_limit_bytes=vmem_limit,
            ),
        )(x_p, w_t, b2)
    else:
        # Megacore split pinned to N when possible: each TC reads half of W
        # (weight streaming is the bottleneck).  K (reduction) is last and
        # "arbitrary"; the output block is resident across K.
        if n_tiles > 1:
            dims = ("arbitrary", "parallel", "arbitrary")
        else:
            dims = ("parallel", "arbitrary", "arbitrary")
        out = pl.pallas_call(
            _linear_sigmoid_kernel_multi_k,
            out_shape=out_shape,
            grid_spec=pltpu.PrefetchScalarGridSpec(
                num_scalar_prefetch=0,
                grid=(m_tiles, n_tiles, k_tiles),
                in_specs=[
                    pl.BlockSpec((tb, tile_k), lambda i, j, k: (i, k)),
                    pl.BlockSpec((tile_k, tile_n), lambda i, j, k: (k, j)),
                    pl.BlockSpec((1, tile_n), lambda i, j, k: (0, j)),
                ],
                out_specs=pl.BlockSpec((tb, tile_n), lambda i, j, k: (i, j)),
                scratch_shapes=[pltpu.VMEM((tb, tile_n), jnp.float32)],
            ),
            compiler_params=pltpu.CompilerParams(
                dimension_semantics=dims,
                vmem_limit_bytes=vmem_limit,
            ),
        )(x_p, w_t, b2)

    return out[:B, :d_out]


# ----------------------------------------------------------------------------
# Test
# ----------------------------------------------------------------------------
if __name__ == "__main__":
    key = jax.random.PRNGKey(0)
    kx, kw, kb = jax.random.split(key, 3)

    # Deliberately un-aligned small shapes to exercise padding + slice-back.
    B, D_in, D_out = 10, 256, 64
    x = jax.random.normal(kx, (B, D_in), dtype=jnp.float32)
    weight = jax.random.normal(kw, (D_out, D_in), dtype=jnp.float32) * 0.05
    bias = jax.random.normal(kb, (D_out,), dtype=jnp.float32) * 0.05

    ref_bf16 = jax.nn.sigmoid(
        jnp.dot(
            x.astype(jnp.bfloat16),
            weight.T.astype(jnp.bfloat16),
            preferred_element_type=jnp.float32,
        )
        + bias
    )
    ref_f32 = jax.nn.sigmoid(x @ weight.T + bias)

    fwd = jax.jit(
        functools.partial(modified_model_forward), static_argnums=(3, 4, 5)
    )

    # --- Path 1: single-K fast path (D_in fits in one K tile) ---------------
    w_t, b2, d_out, tn, tk = prepare_linear_params(weight, bias)
    out = fwd(x, w_t, b2, d_out, tn, tk)
    out = jax.block_until_ready(out)
    assert out.shape == (B, D_out)
    assert jnp.allclose(out, ref_bf16, atol=2e-3, rtol=2e-3)
    assert jnp.allclose(out, ref_f32, atol=2e-2, rtol=2e-2)

    # --- Path 2: multi-K path (force tile_k=128 -> 2 K tiles) ---------------
    w_t2, b22, d_out2, tn2, tk2 = prepare_linear_params(
        weight, bias, max_tile_k=128
    )
    out2 = fwd(x, w_t2, b22, d_out2, tn2, tk2)
    out2 = jax.block_until_ready(out2)
    assert out2.shape == (B, D_out)
    assert jnp.allclose(out2, ref_bf16, atol=2e-3, rtol=2e-3)
    assert jnp.allclose(out2, ref_f32, atol=2e-2, rtol=2e-2)

    print("KERNEL_OK")
</pallas_src>

<mosaic_0001>
module attributes {stable_mosaic.version = 11 : i64} {
  func.func @_linear_sigmoid_kernel_k1(%arg0: i32, %arg1: i32, %arg2: memref<16x256xbf16, #tpu.memory_space<vmem>>, %arg3: memref<256x128xbf16, #tpu.memory_space<vmem>>, %arg4: memref<1x128xf32, #tpu.memory_space<vmem>>, %arg5: memref<16x128xf32, #tpu.memory_space<vmem>>) attributes {dimension_semantics = [#tpu.dimension_semantics<parallel>, #tpu.dimension_semantics<arbitrary>], iteration_bounds = array<i64: 1, 1>, scalar_prefetch = 0 : i64, scratch_operands = 0 : i64, tpu.core_type = #tpu.core_type<tc>, window_params = [{transform_indices = @transform_0, window_bounds = array<i64: 16, 256>}, {transform_indices = @transform_1, window_bounds = array<i64: 256, 128>}, {transform_indices = @transform_2, window_bounds = array<i64: 1, 128>}, {transform_indices = @transform_3, window_bounds = array<i64: 16, 128>}]} {
    %c0 = arith.constant 0 : index
    %c0_0 = arith.constant 0 : index
    %0 = vector.load %arg2[%c0, %c0_0] : memref<16x256xbf16, #tpu.memory_space<vmem>>, vector<16x256xbf16>
    %c0_1 = arith.constant 0 : index
    %c0_2 = arith.constant 0 : index
    %1 = vector.load %arg3[%c0_1, %c0_2] : memref<256x128xbf16, #tpu.memory_space<vmem>>, vector<256x128xbf16>
    %cst = arith.constant dense<0.000000e+00> : vector<16x128xf32>
    %2 = tpu.matmul %0, %1, %cst {dimension_numbers = #tpu.dot_dimension_numbers<[1], [0], [0], [1], [0, 0, 1, 1], [], []>} : vector<16x256xbf16>, vector<256x128xbf16>, vector<16x128xf32> -> vector<16x128xf32>
    %c0_3 = arith.constant 0 : index
    %c0_4 = arith.constant 0 : index
    %3 = vector.load %arg4[%c0_3, %c0_4] : memref<1x128xf32, #tpu.memory_space<vmem>>, vector<1x128xf32>
    %4 = vector.broadcast %3 : vector<1x128xf32> to vector<16x128xf32>
    %5 = arith.addf %2, %4 : vector<16x128xf32>
    %6 = arith.negf %5 : vector<16x128xf32>
    %7 = math.exp %6 : vector<16x128xf32>
    %cst_5 = arith.constant 1.000000e+00 : f32
    %8 = vector.broadcast %cst_5 : f32 to vector<16x128xf32>
    %9 = arith.addf %8, %7 : vector<16x128xf32>
    %10 = arith.divf %8, %9 : vector<16x128xf32>
    %c0_6 = arith.constant 0 : index
    %c0_7 = arith.constant 0 : index
    %11 = vector.load %arg5[%c0_6, %c0_7] : memref<16x128xf32, #tpu.memory_space<vmem>>, vector<16x128xf32>
    tpu.vector_store %arg5[%c0_6, %c0_7], %10 {strides = array<i32>} : memref<16x128xf32, #tpu.memory_space<vmem>>, vector<16x128xf32>,
    return
  }
  func.func @transform_0(%arg0: i32, %arg1: i32) -> (i32, i32) {
    %c0_i32 = arith.constant 0 : i32
    %c0_i32_0 = arith.constant 0 : i32
    return %arg0, %c0_i32 : i32, i32
  }
  func.func @transform_1(%arg0: i32, %arg1: i32) -> (i32, i32) {
    %c0_i32 = arith.constant 0 : i32
    %c0_i32_0 = arith.constant 0 : i32
    return %c0_i32, %arg1 : i32, i32
  }
  func.func @transform_2(%arg0: i32, %arg1: i32) -> (i32, i32) {
    %c0_i32 = arith.constant 0 : i32
    %c0_i32_0 = arith.constant 0 : i32
    return %c0_i32, %arg1 : i32, i32
  }
  func.func @transform_3(%arg0: i32, %arg1: i32) -> (i32, i32) {
    %c0_i32 = arith.constant 0 : i32
    return %arg0, %arg1 : i32, i32
  }
}

</mosaic_0001>

<bundles_post_ra>
// kernel: modified_model_forward.1
= control target key start
LH: loop header
LB: loop body
LE: loop exit
PB: predicated region body
PF: predicated region fallthrough
CT: control target
= control target key end

     0   :  { %8 = vsyncpa [#allocation3], 0  ;;  %s432_s0 = inlined_call_operand.vmem [shape: bf16[16,256], index: 0, kind: input, shape index: {}]   ;;  %s433_s1 = inlined_call_operand.hbm [shape: bf16[256,128], index: 1, kind: input, shape index: {}]   ;;  %s434_s2 = inlined_call_operand.vmem [shape: f32[1,128], index: 2, kind: input, shape index: {}]   ;;  %s435_s3 = inlined_call_operand.hbm [shape: f32[16,128], index: 3, kind: output, shape index: {}]  }
   0x1   :  { %9 = vsyncpa [#allocation4], 0  ;;  %s373_s12 = smov [#allocation2]   ;;  %s325_s16 = scalar_lea.hbm %s433_s1, 2048 }
   0x2   :  { %s17_s13 = sshll.u32 %s373_s12, 4  ;;  %p326_p0 = scmp.ne.s32.totalorder %s433_s1, %s325_s16  ;;  %s18_s13 = int_to_ptr.vmem [resolvable:$true] %s17_s13 }
   0x3   :  { %p329_p1 = scmp.lt.u32.totalorder %s325_s16, %s433_s1 }
   0x5   :  { %p331_p2 = pnand %p329_p1, %p326_p0 }
   0x7   :  { %334 = shalt.err (!%p331_p2)
}
   0x8   :  { %s335_s21 = scalar_lea.vmem %s18_s13, 2048  ;;  %p340_p4 = scmp.lt.s32.totalorder %s18_s13, %s18_s13 }
   0x9   :  { %p336_p3 = scmp.ne.s32.totalorder %s18_s13, %s335_s21  ;;  %p341_p5 = scmp.lt.s32.totalorder %s335_s21, %s335_s21 }
   0xb   :  { %p342_p6 = por %p341_p5, %p340_p4 }
   0xd   :  { %p343_p7 = pnand %p342_p6, %p336_p3 }
   0xf   :  { %346 = shalt.err (!%p343_p7)
}
  0x10   :  { %s374_s22 = smov 64   ;;  %s375_s23 = smov 4  }
  0x11   :  { %23 = dma.hbm_to_vmem [thread:$0]  %s433_s1, 2048, %s18_s13, [#allocation3], %s374_s22, %s374_s22, %s375_s23  }
  0x12   :  { %369 = dma.done.wait [#allocation3], 2048  }
  0x13   :  { %370 = vsyncadd [#allocation3], 4294965248  ;;  %v298_v0 = vld [vmem:[#allocation2 + $0x40] sm:$0xff]   ;;  %v300_v2 = vld [vmem:[#allocation2 + $0x48] sm:$0xff]  }
  0x14   :  { %v299_v1 = vld [vmem:[#allocation2] sm:$0xff]   ;;  %270 = vmatprep.subr.bf16.mxu0 %v298_v0  ;;  %v301_v3 = vld [vmem:[#allocation2 + $0x8] sm:$0xff]   ;;  %v302_v4 = vld [vmem:[#allocation2 + $0x50] sm:$0xff]  }
  0x15   :  { %271 = vmatpush3.bf16.msra.mxu0 %v299_v1  ;;  %v303_v5 = vld [vmem:[#allocation2 + $0x10] sm:$0xff]   ;;  %v304_v6 = vld [vmem:[#allocation2 + $0x58] sm:$0xff]   ;;  %v306_v8 = vld [vmem:[#allocation2 + $0x60] sm:$0xff]  }
  0x16   :  { %272 = vmatprep.subr.bf16.mxu0 %v300_v2  ;;  %v305_v7 = vld [vmem:[#allocation2 + $0x18] sm:$0xff]   ;;  %v307_v9 = vld [vmem:[#allocation2 + $0x20] sm:$0xff]   ;;  %v308_v10 = vld [vmem:[#allocation2 + $0x68] sm:$0xff]  }
  0x17   :  { %v316_v11 = vld [vmem:[%s432_s0 + $0x4] ss:$8 sps:$4 sm:$0xff]   ;;  %v310_v13 = vld [vmem:[#allocation2 + $0x70] sm:$0xff]   ;;  %v312_v15 = vld [vmem:[#allocation2 + $0x78] sm:$0xff]  }
  0x18   :  { %v309_v12 = vld [vmem:[#allocation2 + $0x28] sm:$0xff]   ;;  %209 = vmatprep.mubr.bf16.mxu0 %v316_v11  ;;  %v311_v14 = vld [vmem:[#allocation2 + $0x30] sm:$0xff]   ;;  %v313_v16 = vld [vmem:[#allocation2 + $0x38] sm:$0xff]  }
  0x19   :  { %273 = vmatpush3.bf16.msra.mxu0 %v301_v3  ;;  %v314_v17 = vld [vmem:[%s432_s0] ss:$8 sps:$4 sm:$0xff]   ;;  %s376_s0 = smov [#allocation5]  }
  0x1a   :  { %274 = vmatprep.subr.bf16.mxu0 %v302_v4  ;;  %v249_v19 = vld [vmem:[%s434_s2] ss:$0 sm:$0xff]  ;;  %s237_s4 = sshll.u32 %s376_s0, 4  ;;  %s238_s4 = int_to_ptr.vmem [resolvable:$true] %s237_s4 }
  0x1b   :  { %s347_s2 = scalar_lea.vmem %s238_s4, 256  ;;  %p352_p9 = scmp.lt.s32.totalorder %s238_s4, %s238_s4 }
  0x1c   :  { %p348_p8 = scmp.ne.s32.totalorder %s238_s4, %s347_s2  ;;  %p353_p10 = scmp.lt.s32.totalorder %s347_s2, %s347_s2 }
  0x1d   :  { %275 = vmatpush3.bf16.msra.mxu0 %v303_v5 }
  0x1e   :  { %276 = vmatprep.subr.bf16.mxu0 %v304_v6  ;;  %p354_p11 = por %p353_p10, %p352_p9 }
  0x20   :  { %p355_p12 = pnand %p354_p11, %p348_p8 }
  0x21   :  { %277 = vmatpush3.bf16.msra.mxu0 %v305_v7 }
  0x22   :  { %278 = vmatprep.subr.bf16.mxu0 %v306_v8 }
  0x25   :  { %279 = vmatpush3.bf16.msra.mxu0 %v307_v9 }
  0x26   :  { %280 = vmatprep.subr.bf16.mxu0 %v308_v10 }
  0x29   :  { %281 = vmatpush3.bf16.msra.mxu0 %v309_v12 }
  0x2a   :  { %282 = vmatprep.subr.bf16.mxu0 %v310_v13 }
  0x2d   :  { %283 = vmatpush3.bf16.msra.mxu0 %v311_v14 }
  0x2e   :  { %284 = vmatprep.subr.bf16.mxu0 %v312_v15 }
  0x31   :  { %285 = vmatpush3.bf16.msra.mxu0 %v313_v16 }
  0x34   :  { %210 = vmatmul.mubr.bf16.vlgmr.msra.gmra.mrb[0].mxu0 %v314_v17 }
 0x107   :  { %v286_v18 = vpop.f32.mrb[0].mxu0 }
 0x108   :  { %v287_v20 = vpop.f32.mrb[1].mxu0 }
 0x109   :  { %v288_v21 = vadd.f32 %v287_v20, %v286_v18  ;;  %v289_v22 = vpop.f32.mrb[2].mxu0 }
 0x10a   :  { %v290_v23 = vpop.f32.mrb[3].mxu0 }
 0x10b   :  { %v212_v24 = vadd.f32 %v288_v21, %v249_v19  ;;  %v291_v25 = vadd.f32 %v290_v23, %v289_v22 }
 0x10d   :  { %v268_v26 = vmul.f32 -1.442695, %v212_v24  ;;  %v215_v27 = vadd.f32 %v291_v25, %v249_v19 }
 0x10f   :  { %317 = vpow2.f32 %v268_v26  ;;  %v269_v28 = vmul.f32 -1.442695, %v215_v27 }
 0x111   :  { %319 = vpow2.f32 %v269_v28 }
 0x119   :  { %v318_v29 = vpop.eup %317 }
 0x11a   :  { %v224_v30 = vadd.f32 1.0, %v318_v29 }
 0x11b   :  { %v320_v31 = vpop.eup %319 }
 0x11c   :  { %321 = vrcp.f32 %v224_v30  ;;  %v225_v32 = vadd.f32 1.0, %v320_v31 }
 0x11e   :  { %323 = vrcp.f32 %v225_v32 }
 0x126   :  { %v322_v33 = vpop.eup %321 }
 0x127   :  { %230 = vst [vmem:[#allocation5] sm:$0xff] %v322_v33 }
 0x128   :  { %v324_v34 = vpop.eup %323 }
 0x129   :  { %231 = vst [vmem:[#allocation5 + $0x8] sm:$0xff] %v324_v34 }
 0x12a   :  { %358 = shalt.err (!%p355_p12)
}
 0x12b   :  { %s359_s7 = scalar_lea.hbm %s435_s3, 256 }
 0x12c   :  { %p360_p13 = scmp.ne.s32.totalorder %s435_s3, %s359_s7  ;;  %p363_p0 = scmp.lt.u32.totalorder %s359_s7, %s435_s3 }
 0x12e   :  { %p365_p1 = pnand %p363_p0, %p360_p13 }
 0x130   :  { %368 = shalt.err (!%p365_p1)
}
 0x131   :  { %s377_s12 = smov 128   ;;  %s378_s13 = smov 8  }
 0x132   :  { %243 = dma.vmem_to_hbm [thread:$0]  %s238_s4, 256, %s435_s3, [#allocation4], %s377_s12, %s377_s12, %s378_s13  }
 0x133   :  { %371 = dma.done.wait [#allocation4], 256  }
 0x134   :  { %372 = vsyncadd [#allocation4], 4294967040 }
 0x135   :  { %247 = vsyncpa [#allocation3], 1 }
 0x136   :  { %248 = vsyncpa [#allocation4], 1 }

</bundles_post_ra>
